<compile_context>
chip_gen: v5e
topology: v5e:2x2
jax: 0.10.0
libtpu: 0.0.40
codegen_flags: <defaults>
</compile_context>

<pallas_src>
import functools

import jax
import jax.numpy as jnp
from jax.experimental import pallas as pl
from jax.experimental.pallas import tpu as pltpu

LEAKY_SLOPE = 0.01  # torch.nn.LeakyReLU default


def _leaky_relu(x):
    return jnp.where(x > 0, x, LEAKY_SLOPE * x)


def _round_up(n, m):
    return ((n + m - 1) // m) * m


def critic_onet_kernel(x_ref,
                       w1_ref, b1t_ref,
                       w2t_ref, b2t_ref,
                       w3t_ref, b3t_ref,
                       w4_ref, b4_ref,
                       o_ref):
    # ---- Layer 1: the only big matmul (K=256). (TB, 256) @ (256, 8) -> (TB, 8)
    x = x_ref[...]
    h = jnp.dot(x, w1_ref[...], preferred_element_type=jnp.float32)

    # Switch to the transposed (features, batch) layout with ONE small XLU
    # transpose; downstream activations occupy TB/128 full vregs instead of
    # TB/8 vregs that only use 8 of 128 lanes.
    ht = h.T                                      # (8, TB)
    ht = _leaky_relu(ht + b1t_ref[...])           # bias/act in lane-dense layout

    # ---- Layers 2 & 3 in (8, TB) layout: W.T (8,8) @ h (8,TB) -> (8,TB)
    ht = _leaky_relu(
        jnp.dot(w2t_ref[...], ht, preferred_element_type=jnp.float32)
        + b2t_ref[...])
    ht = _leaky_relu(
        jnp.dot(w3t_ref[...], ht, preferred_element_type=jnp.float32)
        + b3t_ref[...])

    # ---- Output layer (8 -> 1): broadcast-multiply + sublane reduce
    # (VPU + XLU, no M=1 MXU matmul). Ends as a lane-dense (1, TB) row.
    out = jnp.sum(w4_ref[...] * ht, axis=0, keepdims=True) + b4_ref[...]
    o_ref[...] = out.astype(o_ref.dtype)


@functools.partial(jax.jit, static_argnames=("tile_b",))
def critic_onet_forward(x, params, tile_b=2048):
    """x: (B, 256) float32 -> (B, 1) float32."""
    (w1, b1), (w2, b2), (w3, b3), (w4, b4) = params
    B, F = x.shape

    # ---- Batch-tile selection (all static under jit):
    #  * n_steps = cdiv(B, tile_b) amortizes per-step overhead (~0.35 us);
    #  * force >= 2 steps for large B so ("parallel",) can shard across both
    #    v7x TensorCores;
    #  * multi-step TB rounded to 128 keeps x / out blocks vreg-aligned while
    #    bounding padding waste to < 128 rows per step; single-step only needs
    #    the sublane multiple of 8.
    n_steps = -(-B // tile_b)
    if n_steps == 1 and B >= 1024:
        n_steps = 2
    if n_steps == 1:
        TB = _round_up(B, 8)
    else:
        TB = _round_up(-(-B // n_steps), 128)
        n_steps = -(-B // TB)                 # drop fully-padded trailing steps
    Bp = n_steps * TB
    if Bp != B:
        x = jnp.pad(x, ((0, Bp - B), (0, 0)))

    # Tiny weights/biases re-laid-out for the transposed hidden chain.
    b1t = b1.reshape(-1, 1)                   # (8, 1)
    w2t, b2t = w2.T, b2.reshape(-1, 1)        # (8, 8), (8, 1)
    w3t, b3t = w3.T, b3.reshape(-1, 1)        # (8, 8), (8, 1)
    # w4 stays (8, 1) for the multiply-reduce; b4 is (1, 1).

    # Constant index_map -> weights DMA'd once, VMEM-resident for all steps.
    const = lambda a: pl.BlockSpec(a.shape, lambda i: (0, 0),
                                   memory_space=pltpu.VMEM)

    out = pl.pallas_call(
        critic_onet_kernel,
        # Lane-dense output: one (1, TB) row per grid step, concatenated along
        # the lane axis -> wide stores instead of single-lane masked vst.
        out_shape=jax.ShapeDtypeStruct((1, Bp), jnp.float32),
        grid=(n_steps,),
        in_specs=[pl.BlockSpec((TB, F), lambda i: (i, 0),
                               memory_space=pltpu.VMEM),
                  const(w1), const(b1t),
                  const(w2t), const(b2t),
                  const(w3t), const(b3t),
                  const(w4), const(b4)],
        out_specs=pl.BlockSpec((1, TB), lambda i: (0, i),
                               memory_space=pltpu.VMEM),
        compiler_params=pltpu.CompilerParams(
            dimension_semantics=("parallel",)),
    )(x, w1, b1t, w2t, b2t, w3t, b3t, w4, b4)

    return out.reshape(-1)[:B].reshape(B, 1)


def init_params(key, layer_sizes):
    """Deterministic init mimicking torch.nn.Linear default:
    U(-1/sqrt(fan_in), 1/sqrt(fan_in)) for both weight and bias."""
    params = []
    for fan_in, fan_out in zip(layer_sizes[:-1], layer_sizes[1:]):
        key, kw, kb = jax.random.split(key, 3)
        bound = 1.0 / jnp.sqrt(fan_in)
        # stored as (in, out) so kernel does x @ W
        w = jax.random.uniform(kw, (fan_in, fan_out), jnp.float32, -bound, bound)
        b = jax.random.uniform(kb, (1, fan_out), jnp.float32, -bound, bound)
        params.append((w, b))
    return params


def reference_forward(x, params):
    """Pure-JAX reference for correctness check."""
    h = x
    for i, (w, b) in enumerate(params):
        h = h @ w + b
        if i < len(params) - 1:
            h = jnp.where(h > 0, h, LEAKY_SLOPE * h)
    return h


if __name__ == "__main__":
    key = jax.random.PRNGKey(0)

    critic_input_size = 256
    critic_hidden_neurons = [8, 8, 8]
    layer_sizes = [critic_input_size] + critic_hidden_neurons + [1]  # [256,8,8,8,1]

    key, kp = jax.random.split(key)
    params = init_params(kp, layer_sizes)

    # Small-batch check: single full-array block.
    key, kx = jax.random.split(key)
    batch = 8
    x_small = jax.random.normal(kx, (batch, critic_input_size), jnp.float32)
    out_small = jax.block_until_ready(critic_onet_forward(x_small, params))
    ref_small = reference_forward(x_small, params)
    assert out_small.shape == (batch, 1), out_small.shape
    assert jnp.allclose(out_small, ref_small, atol=1e-5, rtol=1e-5), (
        f"max abs diff {jnp.max(jnp.abs(out_small - ref_small))}")

    # Larger, non-divisible batch: default tile -> 2 grid steps (v7x both-TC
    # path), ragged tail handled with < 128 rows of padding.
    key, kx2 = jax.random.split(key)
    batch_big = 2000
    x_big = jax.random.normal(kx2, (batch_big, critic_input_size), jnp.float32)
    out_big = jax.block_until_ready(critic_onet_forward(x_big, params))
    ref_big = reference_forward(x_big, params)
    assert out_big.shape == (batch_big, 1), out_big.shape
    assert jnp.allclose(out_big, ref_big, atol=1e-5, rtol=1e-5), (
        f"max abs diff {jnp.max(jnp.abs(out_big - ref_big))}")

    # Explicit smaller tile -> 4 grid steps; exercises multi-step pipelining
    # with VMEM-resident weights.
    out_big2 = jax.block_until_ready(
        critic_onet_forward(x_big, params, tile_b=512))
    assert jnp.allclose(out_big2, ref_big, atol=1e-5, rtol=1e-5), (
        f"max abs diff {jnp.max(jnp.abs(out_big2 - ref_big))}")

    print("KERNEL_OK")
</pallas_src>

<mosaic_0001>
module attributes {stable_mosaic.version = 11 : i64} {
  func.func @critic_onet_kernel(%arg0: i32, %arg1: memref<8x256xf32, #tpu.memory_space<vmem>>, %arg2: memref<256x8xf32, #tpu.memory_space<vmem>>, %arg3: memref<8x1xf32, #tpu.memory_space<vmem>>, %arg4: memref<8x8xf32, #tpu.memory_space<vmem>>, %arg5: memref<8x1xf32, #tpu.memory_space<vmem>>, %arg6: memref<8x8xf32, #tpu.memory_space<vmem>>, %arg7: memref<8x1xf32, #tpu.memory_space<vmem>>, %arg8: memref<8x1xf32, #tpu.memory_space<vmem>>, %arg9: memref<1x1xf32, #tpu.memory_space<vmem>>, %arg10: memref<1x8xf32, #tpu.memory_space<vmem>>) attributes {dimension_semantics = [#tpu.dimension_semantics<parallel>], iteration_bounds = array<i64: 1>, scalar_prefetch = 0 : i64, scratch_operands = 0 : i64, tpu.core_type = #tpu.core_type<tc>, window_params = [{transform_indices = @transform_0, window_bounds = array<i64: 8, 256>}, {pipeline_mode = #tpu.pipeline_mode<synchronous>, transform_indices = @transform_1, window_bounds = array<i64: 256, 8>}, {pipeline_mode = #tpu.pipeline_mode<synchronous>, transform_indices = @transform_2, window_bounds = array<i64: 8, 1>}, {pipeline_mode = #tpu.pipeline_mode<synchronous>, transform_indices = @transform_3, window_bounds = array<i64: 8, 8>}, {pipeline_mode = #tpu.pipeline_mode<synchronous>, transform_indices = @transform_4, window_bounds = array<i64: 8, 1>}, {pipeline_mode = #tpu.pipeline_mode<synchronous>, transform_indices = @transform_5, window_bounds = array<i64: 8, 8>}, {pipeline_mode = #tpu.pipeline_mode<synchronous>, transform_indices = @transform_6, window_bounds = array<i64: 8, 1>}, {pipeline_mode = #tpu.pipeline_mode<synchronous>, transform_indices = @transform_7, window_bounds = array<i64: 8, 1>}, {pipeline_mode = #tpu.pipeline_mode<synchronous>, transform_indices = @transform_8, window_bounds = array<i64: 1, 1>}, {transform_indices = @transform_9, window_bounds = array<i64: 1, 8>}]} {
    %c0 = arith.constant 0 : index
    %c0_0 = arith.constant 0 : index
    %0 = vector.load %arg1[%c0, %c0_0] : memref<8x256xf32, #tpu.memory_space<vmem>>, vector<8x256xf32>
    %c0_1 = arith.constant 0 : index
    %c0_2 = arith.constant 0 : index
    %1 = vector.load %arg2[%c0_1, %c0_2] : memref<256x8xf32, #tpu.memory_space<vmem>>, vector<256x8xf32>
    %cst = arith.constant dense<0.000000e+00> : vector<8x8xf32>
    %2 = tpu.matmul %0, %1, %cst {dimension_numbers = #tpu.dot_dimension_numbers<[1], [0], [0], [1], [0, 0, 1, 1], [], []>} : vector<8x256xf32>, vector<256x8xf32>, vector<8x8xf32> -> vector<8x8xf32>
    %3 = tpu.transpose %2, [1, 0] : vector<8x8xf32> -> vector<8x8xf32>
    %c0_3 = arith.constant 0 : index
    %c0_4 = arith.constant 0 : index
    %4 = vector.load %arg3[%c0_3, %c0_4] : memref<8x1xf32, #tpu.memory_space<vmem>>, vector<8x1xf32>
    %5 = vector.broadcast %4 : vector<8x1xf32> to vector<8x8xf32>
    %6 = arith.addf %3, %5 : vector<8x8xf32>
    %cst_5 = arith.constant 0.000000e+00 : f32
    %7 = vector.broadcast %cst_5 : f32 to vector<8x8xf32>
    %8 = arith.cmpf ogt, %6, %7 : vector<8x8xf32>
    %cst_6 = arith.constant 0.00999999977 : f32
    %9 = vector.broadcast %cst_6 : f32 to vector<8x8xf32>
    %10 = arith.mulf %9, %6 : vector<8x8xf32>
    %11 = arith.select %8, %6, %10 : vector<8x8xi1>, vector<8x8xf32>
    %c0_7 = arith.constant 0 : index
    %c0_8 = arith.constant 0 : index
    %12 = vector.load %arg4[%c0_7, %c0_8] : memref<8x8xf32, #tpu.memory_space<vmem>>, vector<8x8xf32>
    %cst_9 = arith.constant dense<0.000000e+00> : vector<8x8xf32>
    %13 = tpu.matmul %12, %11, %cst_9 {dimension_numbers = #tpu.dot_dimension_numbers<[1], [0], [0], [1], [0, 0, 1, 1], [], []>} : vector<8x8xf32>, vector<8x8xf32>, vector<8x8xf32> -> vector<8x8xf32>
    %c0_10 = arith.constant 0 : index
    %c0_11 = arith.constant 0 : index
    %14 = vector.load %arg5[%c0_10, %c0_11] : memref<8x1xf32, #tpu.memory_space<vmem>>, vector<8x1xf32>
    %15 = vector.broadcast %14 : vector<8x1xf32> to vector<8x8xf32>
    %16 = arith.addf %13, %15 : vector<8x8xf32>
    %cst_12 = arith.constant 0.000000e+00 : f32
    %17 = vector.broadcast %cst_12 : f32 to vector<8x8xf32>
    %18 = arith.cmpf ogt, %16, %17 : vector<8x8xf32>
    %cst_13 = arith.constant 0.00999999977 : f32
    %19 = vector.broadcast %cst_13 : f32 to vector<8x8xf32>
    %20 = arith.mulf %19, %16 : vector<8x8xf32>
    %21 = arith.select %18, %16, %20 : vector<8x8xi1>, vector<8x8xf32>
    %c0_14 = arith.constant 0 : index
    %c0_15 = arith.constant 0 : index
    %22 = vector.load %arg6[%c0_14, %c0_15] : memref<8x8xf32, #tpu.memory_space<vmem>>, vector<8x8xf32>
    %cst_16 = arith.constant dense<0.000000e+00> : vector<8x8xf32>
    %23 = tpu.matmul %22, %21, %cst_16 {dimension_numbers = #tpu.dot_dimension_numbers<[1], [0], [0], [1], [0, 0, 1, 1], [], []>} : vector<8x8xf32>, vector<8x8xf32>, vector<8x8xf32> -> vector<8x8xf32>
    %c0_17 = arith.constant 0 : index
    %c0_18 = arith.constant 0 : index
    %24 = vector.load %arg7[%c0_17, %c0_18] : memref<8x1xf32, #tpu.memory_space<vmem>>, vector<8x1xf32>
    %25 = vector.broadcast %24 : vector<8x1xf32> to vector<8x8xf32>
    %26 = arith.addf %23, %25 : vector<8x8xf32>
    %cst_19 = arith.constant 0.000000e+00 : f32
    %27 = vector.broadcast %cst_19 : f32 to vector<8x8xf32>
    %28 = arith.cmpf ogt, %26, %27 : vector<8x8xf32>
    %cst_20 = arith.constant 0.00999999977 : f32
    %29 = vector.broadcast %cst_20 : f32 to vector<8x8xf32>
    %30 = arith.mulf %29, %26 : vector<8x8xf32>
    %31 = arith.select %28, %26, %30 : vector<8x8xi1>, vector<8x8xf32>
    %c0_21 = arith.constant 0 : index
    %c0_22 = arith.constant 0 : index
    %32 = vector.load %arg8[%c0_21, %c0_22] : memref<8x1xf32, #tpu.memory_space<vmem>>, vector<8x1xf32>
    %33 = vector.broadcast %32 : vector<8x1xf32> to vector<8x8xf32>
    %34 = arith.mulf %33, %31 : vector<8x8xf32>
    %cst_23 = arith.constant dense<0.000000e+00> : vector<8xf32>
    %35 = vector.multi_reduction <add>, %34, %cst_23 [0] : vector<8x8xf32> to vector<8xf32>
    %36 = vector.shape_cast %35 : vector<8xf32> to vector<1x8xf32>
    %c0_24 = arith.constant 0 : index
    %c0_25 = arith.constant 0 : index
    %37 = vector.load %arg9[%c0_24, %c0_25] : memref<1x1xf32, #tpu.memory_space<vmem>>, vector<1x1xf32>
    %38 = vector.broadcast %37 : vector<1x1xf32> to vector<1x8xf32>
    %39 = arith.addf %36, %38 : vector<1x8xf32>
    %c0_26 = arith.constant 0 : index
    %c0_27 = arith.constant 0 : index
    %40 = vector.load %arg10[%c0_26, %c0_27] : memref<1x8xf32, #tpu.memory_space<vmem>>, vector<1x8xf32>
    tpu.vector_store %arg10[%c0_26, %c0_27], %39 {strides = array<i32>} : memref<1x8xf32, #tpu.memory_space<vmem>>, vector<1x8xf32>,
    return
  }
  func.func @transform_0(%arg0: i32) -> (i32, i32) {
    %c0_i32 = arith.constant 0 : i32
    %c0_i32_0 = arith.constant 0 : i32
    return %arg0, %c0_i32 : i32, i32
  }
  func.func @transform_1(%arg0: i32) -> (i32, i32) {
    %c0_i32 = arith.constant 0 : i32
    %c0_i32_0 = arith.constant 0 : i32
    %c0_i32_1 = arith.constant 0 : i32
    return %c0_i32, %c0_i32_0 : i32, i32
  }
  func.func @transform_2(%arg0: i32) -> (i32, i32) {
    %c0_i32 = arith.constant 0 : i32
    %c0_i32_0 = arith.constant 0 : i32
    %c0_i32_1 = arith.constant 0 : i32
    return %c0_i32, %c0_i32_0 : i32, i32
  }
  func.func @transform_3(%arg0: i32) -> (i32, i32) {
    %c0_i32 = arith.constant 0 : i32
    %c0_i32_0 = arith.constant 0 : i32
    %c0_i32_1 = arith.constant 0 : i32
    return %c0_i32, %c0_i32_0 : i32, i32
  }
  func.func @transform_4(%arg0: i32) -> (i32, i32) {
    %c0_i32 = arith.constant 0 : i32
    %c0_i32_0 = arith.constant 0 : i32
    %c0_i32_1 = arith.constant 0 : i32
    return %c0_i32, %c0_i32_0 : i32, i32
  }
  func.func @transform_5(%arg0: i32) -> (i32, i32) {
    %c0_i32 = arith.constant 0 : i32
    %c0_i32_0 = arith.constant 0 : i32
    %c0_i32_1 = arith.constant 0 : i32
    return %c0_i32, %c0_i32_0 : i32, i32
  }
  func.func @transform_6(%arg0: i32) -> (i32, i32) {
    %c0_i32 = arith.constant 0 : i32
    %c0_i32_0 = arith.constant 0 : i32
    %c0_i32_1 = arith.constant 0 : i32
    return %c0_i32, %c0_i32_0 : i32, i32
  }
  func.func @transform_7(%arg0: i32) -> (i32, i32) {
    %c0_i32 = arith.constant 0 : i32
    %c0_i32_0 = arith.constant 0 : i32
    %c0_i32_1 = arith.constant 0 : i32
    return %c0_i32, %c0_i32_0 : i32, i32
  }
  func.func @transform_8(%arg0: i32) -> (i32, i32) {
    %c0_i32 = arith.constant 0 : i32
    %c0_i32_0 = arith.constant 0 : i32
    %c0_i32_1 = arith.constant 0 : i32
    return %c0_i32, %c0_i32_0 : i32, i32
  }
  func.func @transform_9(%arg0: i32) -> (i32, i32) {
    %c0_i32 = arith.constant 0 : i32
    %c0_i32_0 = arith.constant 0 : i32
    return %c0_i32, %arg0 : i32, i32
  }
}

</mosaic_0001>

<bundles_post_ra>
// kernel: critic_onet_forward.1
= control target key start
LH: loop header
LB: loop body
LE: loop exit
PB: predicated region body
PF: predicated region fallthrough
CT: control target
= control target key end

     0   :  { %s473_s0 = inlined_call_operand.vmem [shape: f32[8,256], index: 0, kind: input, shape index: {}]   ;;  %s474_s1 = inlined_call_operand.vmem [shape: f32[256,8], index: 1, kind: input, shape index: {}]   ;;  %s475_s2 = inlined_call_operand.vmem [shape: f32[8,1], index: 2, kind: input, shape index: {}]   ;;  %s476_s3 = inlined_call_operand.vmem [shape: f32[8,8], index: 3, kind: input, shape index: {}]   ;;  %s477_s4 = inlined_call_operand.vmem [shape: f32[8,1], index: 4, kind: input, shape index: {}]   ;;  %s478_s5 = inlined_call_operand.vmem [shape: f32[8,8], index: 5, kind: input, shape index: {}]   ;;  %s479_s6 = inlined_call_operand.vmem [shape: f32[8,1], index: 6, kind: input, shape index: {}]   ;;  %s480_s7 = inlined_call_operand.vmem [shape: f32[8,1], index: 7, kind: input, shape index: {}]   ;;  %s481_s8 = inlined_call_operand.<no memory space> [shape: f32[1,1], index: 8, kind: input, shape index: {}]   ;;  %s482_s9 = inlined_call_operand.hbm [shape: f32[1,8], index: 9, kind: output, shape index: {}]  }
   0x1   :  { %v14_v0 = vstv %s481_s8 }
   0x2   :  { %15 = vst [vmem:[#allocation2] sm:$0x1] %v14_v0 }
   0x3   :  { %v52_v1 = vld [vmem:[%s474_s1 + $0x78] sm:$0xff]  ;;  %v51_v3 = vld [vmem:[%s474_s1 + $0x70] sm:$0xff]  ;;  %v50_v5 = vld [vmem:[%s474_s1 + $0x68] sm:$0xff]  ;;  %v292_v7 = vmov 0  }
   0x4   :  { %v68_v2 = vld [vmem:[%s474_s1 + $0xf8] sm:$0xff]  ;;  %69 = vmatpush.msra.mxu0 %v52_v1  ;;  %v67_v4 = vld [vmem:[%s474_s1 + $0xf0] sm:$0xff]  ;;  %v66_v6 = vld [vmem:[%s474_s1 + $0xe8] sm:$0xff]  ;;  %263 = vset.pattern.permute.xlu0 %v292_v7 }
   0x5   :  { %89 = vmatpush.msra.mxu1 %v68_v2  ;;  %264 = vset.pattern.permute.xlu1 %v292_v7  ;;  %v49_v8 = vld [vmem:[%s474_s1 + $0x60] sm:$0xff]  ;;  %v48_v10 = vld [vmem:[%s474_s1 + $0x58] sm:$0xff]  ;;  %v47_v12 = vld [vmem:[%s474_s1 + $0x50] sm:$0xff] }
   0x6   :  { %70 = vmatpush.msra.mxu0 %v51_v3  ;;  %v65_v9 = vld [vmem:[%s474_s1 + $0xe0] sm:$0xff]  ;;  %265 = vset.pattern.permute.xlu2 %v292_v7  ;;  %v64_v11 = vld [vmem:[%s474_s1 + $0xd8] sm:$0xff]  ;;  %v63_v13 = vld [vmem:[%s474_s1 + $0xd0] sm:$0xff] }
   0x7   :  { %90 = vmatpush.msra.mxu1 %v67_v4  ;;  %v46_v14 = vld [vmem:[%s474_s1 + $0x48] sm:$0xff]  ;;  %v141_v16 = vld [vmem:[%s475_s2] sm:$0xff] }
   0x8   :  { %71 = vmatpush.msra.mxu0 %v50_v5  ;;  %v62_v15 = vld [vmem:[%s474_s1 + $0xc8] sm:$0xff] }
   0x9   :  { %91 = vmatpush.msra.mxu1 %v66_v6 }
   0xa   :  { %72 = vmatpush.msra.mxu0 %v49_v8 }
   0xb   :  { %92 = vmatpush.msra.mxu1 %v65_v9 }
   0xc   :  { %73 = vmatpush.msra.mxu0 %v48_v10 }
   0xd   :  { %93 = vmatpush.msra.mxu1 %v64_v11 }
   0xe   :  { %74 = vmatpush.msra.mxu0 %v47_v12 }
   0xf   :  { %94 = vmatpush.msra.mxu1 %v63_v13 }
  0x10   :  { %16 = vsyncpa [#allocation4], 0  ;;  %v45_v17 = vld [vmem:[%s474_s1 + $0x40] sm:$0xff]  ;;  %144 = vperm.xlu0 %263, %v141_v16   ;;  %75 = vmatpush.msra.mxu0 %v46_v14  ;;  %v44_v19 = vld [vmem:[%s474_s1 + $0x38] sm:$0xff]  ;;  %vm158_vm1 = vcmask 64512   ;;  %s249_s19 = sshll.u32 %s482_s9, 4  ;;  %s250_s19 = int_to_ptr.hbm [resolvable:$true] %s249_s19 }
  0x11   :  { %v61_v18 = vld [vmem:[%s474_s1 + $0xc0] sm:$0xff]  ;;  %95 = vmatpush.msra.mxu1 %v62_v15  ;;  %v60_v20 = vld [vmem:[%s474_s1 + $0xb8] sm:$0xff]  ;;  %v43_v21 = vld [vmem:[%s474_s1 + $0x30] sm:$0xff]  ;;  %vm240_vm4 = vcmask 57344  }
  0x12   :  { %76 = vmatpush.msra.mxu0 %v45_v17  ;;  %v59_v22 = vld [vmem:[%s474_s1 + $0xb0] sm:$0xff]  ;;  %v42_v23 = vld [vmem:[%s474_s1 + $0x28] sm:$0xff]  ;;  %v41_v25 = vld [vmem:[%s474_s1 + $0x20] sm:$0xff] }
  0x13   :  { %96 = vmatpush.msra.mxu1 %v61_v18  ;;  %v58_v24 = vld [vmem:[%s474_s1 + $0xa8] sm:$0xff]  ;;  %v57_v26 = vld [vmem:[%s474_s1 + $0xa0] sm:$0xff]  ;;  %v40_v27 = vld [vmem:[%s474_s1 + $0x18] sm:$0xff] }
  0x14   :  { %77 = vmatpush.msra.mxu0 %v44_v19  ;;  %v56_v28 = vld [vmem:[%s474_s1 + $0x98] sm:$0xff]  ;;  %v39_v29 = vld [vmem:[%s474_s1 + $0x10] sm:$0xff]  ;;  %v38_v31 = vld [vmem:[%s474_s1 + $0x8] sm:$0xff] }
  0x15   :  { %97 = vmatpush.msra.mxu1 %v60_v20  ;;  %v55_v30 = vld [vmem:[%s474_s1 + $0x90] sm:$0xff]  ;;  %v54_v32 = vld [vmem:[%s474_s1 + $0x88] sm:$0xff]  ;;  %v37_v33 = vld [vmem:[%s474_s1] sm:$0xff] }
  0x16   :  { %78 = vmatpush.msra.mxu0 %v43_v21  ;;  %v53_v34 = vld [vmem:[%s474_s1 + $0x80] sm:$0xff]  ;;  %v36_v36 = vld [vmem:[%s473_s0 + $0x8] sm:$0xff] }
  0x17   :  { %98 = vmatpush.msra.mxu1 %v59_v22  ;;  %v35_v35 = vld [vmem:[%s473_s0] sm:$0xff] }
  0x18   :  { %79 = vmatpush.msra.mxu0 %v42_v23  ;;  %v152_v40 = vld [vmem:[%s477_s4] sm:$0xff] }
  0x19   :  { %99 = vmatpush.msra.mxu1 %v58_v24  ;;  %155 = vperm.xlu1 %264, %v152_v40   ;;  %v186_v41 = vld [vmem:[%s479_s6] sm:$0xff] }
  0x1a   :  { %80 = vmatpush.msra.mxu0 %v41_v25  ;;  %v151_v46 = vld [vmem:[%s476_s3] sm:$0xff]  ;;  %s293_s3 = smov [#allocation3]  }
  0x1b   :  { %100 = vmatpush.msra.mxu1 %v57_v26  ;;  %v218_v48 = vld [vmem:[%s480_s7] sm:$0xff] }
  0x1c   :  { %81 = vmatpush.msra.mxu0 %v40_v27  ;;  %221 = vperm.xlu2 %265, %v218_v48   ;;  %v232_v49 = vld [vmem:[#allocation2] sm:$0x1] }
  0x1d   :  { %101 = vmatpush.msra.mxu1 %v56_v28  ;;  %v185_v54 = vld [vmem:[%s478_s5] sm:$0xff]  ;;  %s247_s5 = sshll.u32 %s293_s3, 4  ;;  %s248_s5 = int_to_ptr.vmem [resolvable:$true] %s247_s5 }
  0x1e   :  { %82 = vmatpush.msra.mxu0 %v39_v29 }
  0x1f   :  { %102 = vmatpush.msra.mxu1 %v55_v30 }
  0x20   :  { %83 = vmatpush.msra.mxu0 %v38_v31 }
  0x21   :  { %103 = vmatpush.msra.mxu1 %v54_v32  ;;  %189 = vperm.xlu1 %264, %v186_v41  }
  0x22   :  { %84 = vmatpush.msra.mxu0 %v37_v33 }
  0x23   :  { %104 = vmatpush.msra.mxu1 %v53_v34  ;;  %85 = vmatmul.f32.vlgmr.msra.gmra.mxu0 %v35_v35 }
  0x24   :  { %105 = vmatmul.f32.vlgmr.msra.gmra.mxu1 %v36_v36  ;;  %235 = vperm.xlu2 %265, %v232_v49  }
  0x76   :  { %v222_v60 = vpop.permute.xlu2 %221 }
  0x7e   :  { %v236_v4 = vpop.permute.xlu2 %235 }
  0x7f   :  { %v238_v7 = vperm.slane %v236_v4, 0 }
  0x82   :  { %v145_v42 = vpop.permute.xlu0 %144 }
  0x8b   :  { %v156_v50 = vpop.permute.xlu1 %155 }
  0x93   :  { %v190_v56 = vpop.permute.xlu1 %189 }
  0xa0   :  { %v86_v37 = vpop.f32.mrf.mxu0 }
  0xa1   :  { %v106_v38 = vpop.f32.mrf.mxu1 }
  0xa2   :  { %v107_v39 = vadd.f32 %v106_v38, %v86_v37 }
  0xa4   :  { %109 = vxpose.xlu0.b32.start.end [1/1] (short) (narrow) %v107_v39, 8 }
 0x148   :  { %v125_v43 = vpop.trf.xlu0 }
 0x149   :  { %v147_v44 = vadd.f32 %v145_v42, %v125_v43 }
 0x14b   :  { %vm148_vm0 = vcmp.gt.f32.partialorder %v147_v44, 0.0  ;;  %v149_v45 = vmul.f32 0.01, %v147_v44 }
 0x14d   :  { %v150_v47 = vsel %vm148_vm0, %v147_v44, %v149_v45 }
 0x14e   :  { %177 = vmatpush.msra.mxu2 %v150_v47 }
 0x14f   :  { %258 = vmatmul.msk.f32.vlgmr.msra.gmra.mxu2 %vm158_vm1, %v151_v46 }
 0x1d2   :  { %v179_v51 = vpop.f32.mrf.mxu2 }
 0x1d3   :  { %v180_v52 = vadd.f32 %v179_v51, %v156_v50 }
 0x1d5   :  { %vm182_vm2 = vcmp.gt.f32.partialorder %v180_v52, 0.0  ;;  %v183_v53 = vmul.f32 0.01, %v180_v52 }
 0x1d7   :  { %v184_v55 = vsel %vm182_vm2, %v180_v52, %v183_v53 }
 0x1d8   :  { %210 = vmatpush.msra.mxu3 %v184_v55 }
 0x1d9   :  { %259 = vmatmul.msk.f32.vlgmr.msra.gmra.mxu3 %vm158_vm1, %v185_v54 }
 0x25c   :  { %v212_v57 = vpop.f32.mrf.mxu3 }
 0x25d   :  { %v213_v58 = vadd.f32 %v212_v57, %v190_v56 }
 0x25f   :  { %vm215_vm3 = vcmp.gt.f32.partialorder %v213_v58, 0.0  ;;  %v216_v59 = vmul.f32 0.01, %v213_v58 }
 0x261   :  { %v217_v61 = vsel %vm215_vm3, %v213_v58, %v216_v59 }
 0x262   :  { %v224_v62 = vmul.f32 %v222_v60, %v217_v61 }
 0x264   :  { %v225_v63 = vsel %vm158_vm1, %v224_v62, 0.0 }
 0x265   :  { %v226_v0 = vrot.slane %v225_v63, 4 }
 0x267   :  { %v227_v1 = vadd.f32 %v226_v0, %v225_v63 }
 0x269   :  { %v228_v2 = vrot.slane %v227_v1, 2 }
 0x26b   :  { %v229_v3 = vadd.f32 %v228_v2, %v227_v1 }
 0x26d   :  { %v230_v5 = vrot.slane %v229_v3, 1 }
 0x26f   :  { %v231_v6 = vadd.f32 %v230_v5, %v229_v3 }
 0x271   :  { %v239_v8 = vadd.f32 %v238_v7, %v231_v6 }
 0x273   :  { %241 = vst.msk [vmem:[#allocation3] sm:$0x1] %vm240_vm4, %v239_v8 }
 0x274   :  { %252 = dma.vmem_to_hbm [thread:$0]  %s248_s5, 16, %s250_s19, [#allocation4]  }
 0x275   :  { %290 = dma.done.wait [#allocation4], 16  }
 0x276   :  { %291 = vsyncadd [#allocation4], 4294967280 }
 0x277   :  { %257 = vsyncpa [#allocation4], 1 }

</bundles_post_ra>
